<compile_context>
chip_gen: v7x
topology: tpu7x:2x2x1
jax: 0.10.0
libtpu: 0.0.40
codegen_flags: <defaults>
</compile_context>

<pallas_src>
import functools
import math

import jax
import jax.numpy as jnp
from jax.experimental import pallas as pl
from jax.experimental.pallas import tpu as pltpu


def _round_up(x, m):
    return ((x + m - 1) // m) * m


@functools.lru_cache(maxsize=None)
def _vmem_budgets():
    """Return (tile-selection budget, vmem_limit_bytes) for this TPU gen."""
    vmem = None
    try:
        info = pltpu.get_tpu_info()
        vmem = getattr(info, "vmem_capacity_bytes", None)
    except Exception:
        vmem = None
    if not vmem:
        vmem = 64 * 1024 * 1024          # conservative fallback (v7x: 64 MiB/TC)
    vmem = int(vmem)
    budget = vmem // 2                    # tiles incl. double buffering
    limit = min(int(vmem * 0.75), vmem - 8 * 1024 * 1024)
    return budget, max(limit, 32 * 1024 * 1024)


@functools.lru_cache(maxsize=None)
def _num_tensorcores():
    """Best-effort TensorCore count (v7x megacore -> keep >= 2 batch tiles)."""
    try:
        info = pltpu.get_tpu_info()
        for name in ("num_cores", "num_tensorcores", "core_count",
                     "tensorcore_count"):
            v = getattr(info, name, None)
            if v:
                return int(v)
    except Exception:
        pass
    try:
        d = jax.devices()[0]
        for name in ("num_cores", "core_count"):
            v = getattr(d, name, None)
            if v:
                return int(v)
    except Exception:
        pass
    return 1


def _choose_tiles(B, D, C, x_bytes, w_bytes, o_bytes, out_is_f32,
                  budget_bytes, sub_min, want_batch_split):
    """Pick (block_b, block_c): prefer nc == 1 (weight DMAed once), then the
    largest batch tile that fits the VMEM budget."""
    b_cap = _round_up(B, sub_min)
    c_full = _round_up(C, 128)

    bb_cands = []
    for c in (512, 256, 128, 64, 32, 16, 8):
        v = _round_up(min(c, b_cap), sub_min)
        if v <= b_cap and v not in bb_cands:
            bb_cands.append(v)
    if not bb_cands:
        bb_cands = [b_cap]

    bc_cands = [c_full]                       # nc == 1 first
    for c in (2048, 1024, 512, 256, 128):
        if c < c_full and c not in bc_cands:
            bc_cands.append(c)

    def vmem_est(bb, bc):
        c_pad = _round_up(C, bc)
        est = 2 * bb * D * x_bytes            # x tile (double-buffered)
        est += 2 * D * bc * w_bytes           # weight tile
        est += 2 * 8 * bc * 4                 # bias tile (sublane-padded)
        est += 2 * bb * c_pad * o_bytes       # resident output block
        if (not out_is_f32) and c_pad != bc:  # narrow out dtype, multi-tile
            est += bb * c_pad * 4             # f32 logit scratch
        est += 2 * bb * 128 * 4               # m / l scratch (lane-padded)
        return est

    for bc in bc_cands:
        for bb in bb_cands:
            if vmem_est(bb, bc) <= budget_bytes:
                # Megacore: never collapse the whole batch into one tile.
                if want_batch_split and bb == b_cap and b_cap >= 2 * sub_min:
                    half = _round_up(-(-b_cap // 2), sub_min)
                    if vmem_est(half, bc) <= budget_bytes:
                        bb = half
                return bb, bc
    return bb_cands[-1], bc_cands[-1]


def _linear_logsoftmax_kernel(block_c, n_c, use_scratch,
                              x_ref, w_ref, b_ref, o_ref, *scratch):
    # x_ref: (TB, D)   w_ref: (D, TC)   b_ref: (1, TC)   o_ref: (TB, C_pad)
    if use_scratch:                      # narrow out dtype: keep f32 stash
        logit_dst, m_scr, l_scr = scratch
    elif n_c > 1:                        # f32 output doubles as the stash
        m_scr, l_scr = scratch
        logit_dst = o_ref

    logits = jnp.dot(x_ref[...], w_ref[...],
                     preferred_element_type=jnp.float32) + b_ref[...]

    if n_c == 1:
        # Single class tile: closed-form logsumexp, one lane-dense store.
        m = jnp.max(logits, axis=1, keepdims=True)
        lse = m + jnp.log(jnp.sum(jnp.exp(logits - m), axis=1, keepdims=True))
        o_ref[...] = (logits - lse).astype(o_ref.dtype)
        return

    j = pl.program_id(1)

    @pl.when(j == 0)
    def _init():
        m_scr[...] = jnp.full_like(m_scr, -jnp.inf)
        l_scr[...] = jnp.zeros_like(l_scr)

    # Online logsumexp update over the class-tile axis.
    m_old = m_scr[...]
    m_new = jnp.maximum(m_old, jnp.max(logits, axis=1, keepdims=True))
    l_scr[...] = (l_scr[...] * jnp.exp(m_old - m_new)
                  + jnp.sum(jnp.exp(logits - m_new), axis=1, keepdims=True))
    m_scr[...] = m_new

    # Single dynamic, 128-aligned store of this class tile's raw logits.
    col = pl.multiple_of(j * block_c, block_c)
    logit_dst[:, pl.ds(col, block_c)] = logits

    @pl.when(j == pl.num_programs(1) - 1)
    def _finalize():
        lse = m_scr[...] + jnp.log(l_scr[...])
        o_ref[...] = (logit_dst[...] - lse).astype(o_ref.dtype)


@functools.partial(jax.jit,
                   static_argnames=("block_b", "block_c", "matmul_dtype"))
def linear_logsoftmax(x, weight, bias, *, block_b=None, block_c=None,
                      matmul_dtype=None):
    """x: [B, D]; weight: [C, D] (PyTorch nn.Linear layout); bias: [C].

    Returns log_softmax(x @ weight.T + bias, axis=1), shape [B, C], dtype
    x.dtype. matmul_dtype (e.g. "bfloat16") narrows only the MXU operands
    (cast once here); accumulation and all softmax math stay in float32.
    """
    B, D = x.shape
    C, D_w = weight.shape
    assert D == D_w and bias.shape == (C,)
    out_dtype = x.dtype
    out_is_f32 = jnp.dtype(out_dtype) == jnp.float32

    if matmul_dtype is not None:
        mm_dtype = jnp.dtype(matmul_dtype)
        x = x.astype(mm_dtype)
        weight = weight.astype(mm_dtype)

    x_bytes = x.dtype.itemsize
    w_bytes = weight.dtype.itemsize
    o_bytes = jnp.dtype(out_dtype).itemsize
    sub_min = max(8, 32 // x_bytes)      # 8 for f32, 16 for bf16, 32 for int8

    budget, vmem_limit = _vmem_budgets()
    if block_b is None or block_c is None:
        bb, bc = _choose_tiles(B, D, C, x_bytes, w_bytes, o_bytes, out_is_f32,
                               budget, sub_min, _num_tensorcores() > 1)
        block_b = block_b if block_b is not None else bb
        block_c = block_c if block_c is not None else bc
    assert block_b % sub_min == 0 and block_c % 128 == 0

    B_pad = _round_up(B, block_b)
    C_pad = _round_up(C, block_c)
    nb, nc = B_pad // block_b, C_pad // block_c

    if B_pad != B:                                   # ragged batch: zero-pad
        x = jnp.pad(x, ((0, B_pad - B), (0, 0)))

    # One-time wrapper transpose to MXU-native [D, C_pad]; padded classes get
    # zero weights + bias -1e30 so exp(logit - m) == 0 in the denominator.
    w_t = weight.T
    bias_f = bias.astype(jnp.float32)
    if C_pad != C:
        w_t = jnp.pad(w_t, ((0, 0), (0, C_pad - C)))
        bias_f = jnp.pad(bias_f, (0, C_pad - C), constant_values=-1e30)
    bias2 = bias_f.reshape(1, C_pad)

    use_scratch = (not out_is_f32) and nc > 1
    kernel = functools.partial(_linear_logsoftmax_kernel,
                               block_c, nc, use_scratch)

    scratch_shapes = []
    if use_scratch:
        scratch_shapes.append(pltpu.VMEM((block_b, C_pad), jnp.float32))
    if nc > 1:
        scratch_shapes.append(pltpu.VMEM((block_b, 1), jnp.float32))  # run max
        scratch_shapes.append(pltpu.VMEM((block_b, 1), jnp.float32))  # run sum

    w_streams = 1 if nc == 1 else nb      # nc == 1 -> weight DMAed once total
    cost = pl.CostEstimate(
        flops=2 * B_pad * D * C_pad,
        transcendentals=B_pad * C_pad,
        bytes_accessed=(B_pad * D * x_bytes
                        + w_streams * D * C_pad * w_bytes
                        + C_pad * 4
                        + B_pad * C_pad * o_bytes),
    )

    out = pl.pallas_call(
        kernel,
        out_shape=jax.ShapeDtypeStruct((B_pad, C_pad), out_dtype),
        grid_spec=pltpu.PrefetchScalarGridSpec(
            num_scalar_prefetch=0,
            grid=(nb, nc),
            in_specs=[
                pl.BlockSpec((block_b, D), lambda i, j: (i, 0)),   # x tile
                pl.BlockSpec((D, block_c), lambda i, j: (0, j)),   # weight tile
                pl.BlockSpec((1, block_c), lambda i, j: (0, j)),   # bias tile
            ],
            out_specs=pl.BlockSpec((block_b, C_pad), lambda i, j: (i, 0)),
            scratch_shapes=scratch_shapes,
        ),
        compiler_params=pltpu.CompilerParams(
            dimension_semantics=("parallel", "arbitrary"),
            vmem_limit_bytes=vmem_limit,
        ),
        cost_estimate=cost,
    )(x, w_t, bias2)
    return out[:B, :C]


def _reference(x, weight, bias):
    logits = jnp.dot(x.astype(jnp.float32), weight.astype(jnp.float32).T,
                     precision=jax.lax.Precision.HIGHEST)
    logits = logits + bias[None, :].astype(jnp.float32)
    return jax.nn.log_softmax(logits, axis=1)


if __name__ == "__main__":
    key = jax.random.PRNGKey(0)

    # Case 1: module-consistent small shapes (batch=8, input_dim=32, nclass=16).
    B, D, C = 8, 32, 16
    k1, k2, k3, key = jax.random.split(key, 4)
    bound = 1.0 / math.sqrt(D)
    x = jax.random.normal(k1, (B, D), jnp.float32)
    w = jax.random.uniform(k2, (C, D), jnp.float32, -bound, bound)
    b = jax.random.uniform(k3, (C,), jnp.float32, -bound, bound)
    out = jax.block_until_ready(linear_logsoftmax(x, w, b))
    ref = _reference(x, w, b)
    assert out.shape == (B, C) and out.dtype == x.dtype
    assert jnp.allclose(out, ref, atol=2e-5, rtol=2e-5), "case 1 mismatch"

    # Case 2: ragged batch + multiple batch/class tiles (padding, online
    # logsumexp, dynamic pl.ds stores straight into the resident f32 output).
    B2, D2, C2 = 40, 128, 300
    k1, k2, k3, key = jax.random.split(key, 4)
    bound = 1.0 / math.sqrt(D2)
    x2 = jax.random.normal(k1, (B2, D2), jnp.float32)
    w2 = jax.random.uniform(k2, (C2, D2), jnp.float32, -bound, bound)
    b2 = jax.random.uniform(k3, (C2,), jnp.float32, -bound, bound)
    out2 = jax.block_until_ready(
        linear_logsoftmax(x2, w2, b2, block_b=16, block_c=128))
    ref2 = _reference(x2, w2, b2)
    assert out2.shape == (B2, C2)
    assert jnp.allclose(out2, ref2, atol=2e-5, rtol=2e-5), "case 2 mismatch"

    # Case 3: bf16 MXU operands (cast once in wrapper); softmax stays f32.
    out3 = jax.block_until_ready(
        linear_logsoftmax(x2, w2, b2, matmul_dtype="bfloat16"))
    assert out3.dtype == jnp.float32
    assert jnp.allclose(out3, ref2, atol=5e-2, rtol=5e-2), "case 3 mismatch"

    # Case 4: bf16 inputs + multiple class tiles (exercises the narrow-dtype
    # f32 logit-scratch path and bf16 output).
    x4 = x2.astype(jnp.bfloat16)
    w4 = w2.astype(jnp.bfloat16)
    out4 = jax.block_until_ready(
        linear_logsoftmax(x4, w4, b2, block_b=16, block_c=128))
    ref4 = _reference(x4, w4, b2)
    assert out4.dtype == jnp.bfloat16 and out4.shape == (B2, C2)
    assert jnp.allclose(out4.astype(jnp.float32), ref4, atol=6e-2, rtol=1e-2), \
        "case 4 mismatch"

    print("KERNEL_OK")
</pallas_src>

<mosaic_0001>
module attributes {stable_mosaic.version = 11 : i64} {
  func.func @_linear_logsoftmax_kernel(%arg0: i32, %arg1: i32, %arg2: memref<8x32xf32, #tpu.memory_space<vmem>>, %arg3: memref<32x128xf32, #tpu.memory_space<vmem>>, %arg4: memref<1x128xf32, #tpu.memory_space<vmem>>, %arg5: memref<8x128xf32, #tpu.memory_space<vmem>>) attributes {dimension_semantics = [#tpu.dimension_semantics<parallel>, #tpu.dimension_semantics<arbitrary>], iteration_bounds = array<i64: 1, 1>, scalar_prefetch = 0 : i64, scratch_operands = 0 : i64, tpu.core_type = #tpu.core_type<tc>, window_params = [{transform_indices = @transform_0, window_bounds = array<i64: 8, 32>}, {transform_indices = @transform_1, window_bounds = array<i64: 32, 128>}, {transform_indices = @transform_2, window_bounds = array<i64: 1, 128>}, {transform_indices = @transform_3, window_bounds = array<i64: 8, 128>}]} {
    %c0 = arith.constant 0 : index
    %c0_0 = arith.constant 0 : index
    %0 = vector.load %arg2[%c0, %c0_0] : memref<8x32xf32, #tpu.memory_space<vmem>>, vector<8x32xf32>
    %c0_1 = arith.constant 0 : index
    %c0_2 = arith.constant 0 : index
    %1 = vector.load %arg3[%c0_1, %c0_2] : memref<32x128xf32, #tpu.memory_space<vmem>>, vector<32x128xf32>
    %cst = arith.constant dense<0.000000e+00> : vector<8x128xf32>
    %2 = tpu.matmul %0, %1, %cst {dimension_numbers = #tpu.dot_dimension_numbers<[1], [0], [0], [1], [0, 0, 1, 1], [], []>} : vector<8x32xf32>, vector<32x128xf32>, vector<8x128xf32> -> vector<8x128xf32>
    %c0_3 = arith.constant 0 : index
    %c0_4 = arith.constant 0 : index
    %3 = vector.load %arg4[%c0_3, %c0_4] : memref<1x128xf32, #tpu.memory_space<vmem>>, vector<1x128xf32>
    %4 = vector.broadcast %3 : vector<1x128xf32> to vector<8x128xf32>
    %5 = arith.addf %2, %4 : vector<8x128xf32>
    %cst_5 = arith.constant dense<0xFF800000> : vector<8xf32>
    %6 = vector.multi_reduction <maximumf>, %5, %cst_5 [1] : vector<8x128xf32> to vector<8xf32>
    %7 = vector.shape_cast %6 : vector<8xf32> to vector<8x1xf32>
    %8 = vector.broadcast %7 : vector<8x1xf32> to vector<8x128xf32>
    %9 = arith.subf %5, %8 : vector<8x128xf32>
    %10 = math.exp %9 : vector<8x128xf32>
    %cst_6 = arith.constant dense<0.000000e+00> : vector<8xf32>
    %11 = vector.multi_reduction <add>, %10, %cst_6 [1] : vector<8x128xf32> to vector<8xf32>
    %12 = vector.shape_cast %11 : vector<8xf32> to vector<8x1xf32>
    %13 = math.log %12 : vector<8x1xf32>
    %14 = arith.addf %7, %13 : vector<8x1xf32>
    %15 = vector.broadcast %14 : vector<8x1xf32> to vector<8x128xf32>
    %16 = arith.subf %5, %15 : vector<8x128xf32>
    %c0_7 = arith.constant 0 : index
    %c0_8 = arith.constant 0 : index
    %17 = vector.load %arg5[%c0_7, %c0_8] : memref<8x128xf32, #tpu.memory_space<vmem>>, vector<8x128xf32>
    tpu.vector_store %arg5[%c0_7, %c0_8], %16 {strides = array<i32>} : memref<8x128xf32, #tpu.memory_space<vmem>>, vector<8x128xf32>,
    return
  }
  func.func @transform_0(%arg0: i32, %arg1: i32) -> (i32, i32) {
    %c0_i32 = arith.constant 0 : i32
    %c0_i32_0 = arith.constant 0 : i32
    return %arg0, %c0_i32 : i32, i32
  }
  func.func @transform_1(%arg0: i32, %arg1: i32) -> (i32, i32) {
    %c0_i32 = arith.constant 0 : i32
    %c0_i32_0 = arith.constant 0 : i32
    return %c0_i32, %arg1 : i32, i32
  }
  func.func @transform_2(%arg0: i32, %arg1: i32) -> (i32, i32) {
    %c0_i32 = arith.constant 0 : i32
    %c0_i32_0 = arith.constant 0 : i32
    return %c0_i32, %arg1 : i32, i32
  }
  func.func @transform_3(%arg0: i32, %arg1: i32) -> (i32, i32) {
    %c0_i32 = arith.constant 0 : i32
    %c0_i32_0 = arith.constant 0 : i32
    return %arg0, %c0_i32 : i32, i32
  }
}

</mosaic_0001>

<bundles_post_ra>
// kernel: linear_logsoftmax.1
= control target key start
LH: loop header
LB: loop body
LE: loop exit
PB: predicated region body
PF: predicated region fallthrough
CT: control target
= control target key end

     0   :  { %v183_v3 = vmov 0.0|0.0   ;;  %vm184_vm0 = vmmov 0   ;;  %v185_v6 = vmov 0.0   ;;  %s237_s0 = inlined_call_operand.vmem [shape: f32[8,32], index: 0, kind: input, shape index: {}]   ;;  %s238_s1 = inlined_call_operand.vmem [shape: f32[32,128], index: 1, kind: input, shape index: {}]   ;;  %s239_s2 = inlined_call_operand.vmem [shape: f32[1,128], index: 2, kind: input, shape index: {}]   ;;  %s240_s3 = inlined_call_operand.hbm [shape: f32[8,128], index: 3, kind: output, shape index: {}]  }
   0x1   :  { %v16_v0 = vld [vmem:[%s238_s1] sm:$0xff]  ;;  %v17_v1 = vld [vmem:[%s238_s1 + $0x8] sm:$0xff]  ;;  %v18_v2 = vld [vmem:[%s238_s1 + $0x10] sm:$0xff]  ;;  %145 = vmatprep.subr.bf16.mxu0 %v183_v3  ;;  %142 = vmatprep.mubr.msk.f32.mxu0 %vm184_vm0, %v185_v6 }
   0x2   :  { %v146_v4 = vpack.c.bf16 %v17_v1, %v16_v0  ;;  %v19_v5 = vld [vmem:[%s238_s1 + $0x18] sm:$0xff] }
   0x3   :  { %8 = vsyncpa [#allocation3], 0  ;;  %v149_v7 = vpack.c.bf16 %v19_v5, %v18_v2  ;;  %v15_v8 = vld [vmem:[%s237_s0] sm:$0xff]  ;;  %vm27_vm1 = vcmask 261120   ;;  %s186_s0 = smov [#allocation2]  }
   0x4   :  { %147 = vmatpush3.bf16.msra.mxu0 %v146_v4  ;;  %v127_v9 = vld [vmem:[%s239_s2] ss:$0 sm:$0xff]  ;;  %s119_s1 = sshll.u32 %s186_s0, 4  ;;  %s120_s1 = int_to_ptr.vmem [resolvable:$true] %s119_s1 }
   0x5   :  { %148 = vmatprep.subr.bf16.mxu0 %v183_v3  ;;  %s159_s2 = scalar_lea.vmem %s120_s1, 128  ;;  %p164_p1 = scmp.lt.s32.totalorder %s120_s1, %s120_s1 }
   0x6   :  { %p160_p0 = scmp.ne.s32.totalorder %s120_s1, %s159_s2  ;;  %p165_p2 = scmp.lt.s32.totalorder %s159_s2, %s159_s2 }
   0x8   :  { %150 = vmatpush3.bf16.msra.mxu0 %v149_v7  ;;  %p166_p3 = por %p165_p2, %p164_p1 }
   0xa   :  { %p167_p4 = pnand %p166_p3, %p160_p0 }
   0xb   :  { %143 = vmatmul.mubr.msk.f32.vlgmr.msra.gmra.mrb[0].mxu0 %vm27_vm1, %v15_v8 }
  0xde   :  { %v97_v10 = vpop.f32.mrb[0].mxu0 }
  0xdf   :  { %v98_v11 = vadd.f32 %v127_v9, %v97_v10  ;;  %v144_v12 = vpop.f32.mrb[1].mxu0 }
  0xe1   :  { %101 = vmax.xlane.f32.xlu0 %v98_v11 }
 0x16e   :  { %v102_v13 = vpop.xlane.xlu0 %101 }
 0x16f   :  { %v103_v14 = vsub.f32 %v98_v11, %v102_v13 }
 0x171   :  { %v104_v15 = vmul.f32 1.442695, %v103_v14 }
 0x173   :  { %155 = vpow2.f32 %v104_v15 }
 0x17d   :  { %v156_v16 = vpop.eup %155 }
 0x17e   :  { %106 = vadd.xlane.f32.xlu0 %v156_v16 }
 0x20b   :  { %v107_v17 = vpop.xlane.xlu0 %106 }
 0x20c   :  { %157 = vlog2.f32 %v107_v17 }
 0x216   :  { %v158_v18 = vpop.eup %157 }
 0x217   :  { %v109_v19 = vmul.f32 0.6931472, %v158_v18 }
 0x219   :  { %v110_v20 = vadd.f32 %v109_v19, %v102_v13 }
 0x21b   :  { %v111_v21 = vsub.f32 %v98_v11, %v110_v20 }
 0x21d   :  { %112 = vst [vmem:[#allocation2] sm:$0xff] %v111_v21 }
 0x21e   :  { %170 = shalt.err (!%p167_p4)
}
 0x21f   :  { %s171_s26 = scalar_lea.hbm %s240_s3, 128 }
 0x220   :  { %p172_p5 = scmp.ne.s32.totalorder %s240_s3, %s171_s26  ;;  %p175_p6 = scmp.lt.u32.totalorder %s171_s26, %s240_s3 }
 0x222   :  { %p177_p7 = pnand %p175_p6, %p172_p5 }
 0x224   :  { %180 = shalt.err (!%p177_p7)
}
 0x225   :  { %122 = dma.vmem_to_hbm [thread:$0]  %s120_s1, 128, %s240_s3, [#allocation3]  }
 0x226   :  { %181 = dma.done.wait [#allocation3], 128  }
 0x227   :  { %182 = vsyncadd [#allocation3], 4294967168 }
 0x228   :  { %126 = vsyncpa [#allocation3], 1 }

</bundles_post_ra>
